<compile_context>
chip_gen: v7x
topology: tpu7x:2x2x1
jax: 0.10.0
libtpu: 0.0.40
codegen_flags: <defaults>
</compile_context>

<pallas_src>
import jax
import jax.numpy as jnp
import numpy as np
from jax.experimental import pallas as pl
from jax.experimental.pallas import tpu as pltpu

_EPS = 1e-5


# --------------------------------------------------------------------------------------
# in-kernel helpers
# --------------------------------------------------------------------------------------
def _conv3x3(xpad_bf16, a_ref):
    """3x3 'same' conv of one image tile as ONE MXU matmul.

    xpad_bf16 : (H+2, W*Cin) bf16 value; rows 0 and H+1 are the zero H-halo.  The dx shift
                and the 'same' W zero-padding are folded into the banded weight matrix.
    a_ref     : (3*W*Cin, W*Cout) bf16 ref (vertical stack of the per-dy banded matrices).
    returns   : (H, W*Cout) f32
    """
    hp = xpad_bf16.shape[0]
    h = hp - 2
    lhs = jnp.concatenate(
        [xpad_bf16[0:h, :], xpad_bf16[1:h + 1, :], xpad_bf16[2:h + 2, :]], axis=-1)
    return jnp.dot(lhs, a_ref[...], preferred_element_type=jnp.float32)


def _col_stats(acc):
    """Per-lane (sum, sum of squares) of an (H, W*C) f32 slab -> (2, W*C) f32."""
    return jnp.concatenate(
        [jnp.sum(acc, axis=0, keepdims=True),
         jnp.sum(acc * acc, axis=0, keepdims=True)], axis=0)


# --------------------------------------------------------------------------------------
# kernels (grid=(N,), one image per grid step, "parallel" -> megacore-sharded on v7x)
# --------------------------------------------------------------------------------------
def conv_stats_kernel(x_ref, a_ref, y_ref, s_ref):
    """pass 1: conv1; emit bf16 H-halo-padded raw activation + per-tile partial BN stats.

    x_ref : (H+2, W*Cin)       bf16   zero H-halo input, lane index = w*Cin + ci
    a_ref : (3*W*Cin, W*Cmid)  bf16   banded conv1 weights (dy-stacked along K)
    y_ref : (H+2, W*Cmid)      bf16   raw conv1 output, halo rows zeroed
    s_ref : (2, W*Cmid)        f32    per-lane (sum, sumsq) of this tile
    """
    acc = _conv3x3(x_ref[...], a_ref)                       # (H, W*Cmid) f32
    s_ref[...] = _col_stats(acc)
    zrow = jnp.zeros((1, acc.shape[1]), y_ref.dtype)
    y_ref[...] = jnp.concatenate([zrow, acc.astype(y_ref.dtype), zrow], axis=0)


def bn_relu_conv_stats_kernel(x_ref, ss_ref, a_ref, y_ref, s_ref):
    """pass 2: BN1 affine + ReLU (halo kept exactly zero) + conv2 + partial BN2 stats.

    x_ref  : (H+2, W*Cmid)      bf16   raw conv1 (halo rows zero)
    ss_ref : (2, W*Cmid)        f32    per-lane (scale, shift) folded from global BN1 stats
    a_ref  : (3*W*Cmid, W*Cout) bf16   banded conv2 weights
    y_ref  : (H, W*Cout)        bf16   raw conv2 output
    s_ref  : (2, W*Cout)        f32    per-lane (sum, sumsq) of this tile
    """
    hp, wc = x_ref.shape
    h = hp - 2
    x = x_ref[...].astype(jnp.float32)                      # all elementwise math in f32
    y = jnp.maximum(x * ss_ref[0:1, :] + ss_ref[1:2, :], 0.0)
    row = jax.lax.broadcasted_iota(jnp.int32, (hp, wc), 0)
    y = jnp.where((row >= 1) & (row <= h), y, 0.0)          # conv2's H-halo must stay zero
    acc = _conv3x3(y.astype(jnp.bfloat16), a_ref)           # (H, W*Cout) f32
    s_ref[...] = _col_stats(acc)
    y_ref[...] = acc.astype(y_ref.dtype)


def bn_relu_kernel(x_ref, ss_ref, o_ref):
    """pass 3: BN2 affine + ReLU, dense bf16 store.

    x_ref  : (H, W*Cout) bf16, ss_ref : (2, W*Cout) f32, o_ref : (H, W*Cout) bf16
    """
    x = x_ref[...].astype(jnp.float32)
    o_ref[...] = jnp.maximum(x * ss_ref[0:1, :] + ss_ref[1:2, :], 0.0).astype(o_ref.dtype)


# --------------------------------------------------------------------------------------
# wrapper-side prep (tiny ops + one fused layout pass over x)
# --------------------------------------------------------------------------------------
def _banded_conv_weights(w_hwio, width):
    """Fold 3x3 conv dx shift + 'same' W zero-padding into a (3*W*Cin, W*Cout) bf16 matrix.

    Row block dy multiplies the x[h+dy-1] lane slab of the K-concatenated LHS.
    """
    mats = []
    for dy in range(3):
        a = None
        for dx in range(3):
            shift = jnp.eye(width, k=1 - dx, dtype=jnp.float32)   # w_in = w_out + dx - 1
            term = jnp.kron(shift, w_hwio[dy, dx])                # (W*Cin, W*Cout)
            a = term if a is None else a + term
        mats.append(a)
    return jnp.concatenate(mats, axis=0).astype(jnp.bfloat16)     # (3*W*Cin, W*Cout)


def _bn_fold(stats, gamma, beta, m, width):
    """Reduce per-tile per-lane (sum, sumsq) -> per-lane (scale, shift) for the affine FMA.

    stats : (N_tiles, 2, W*C) f32.  All math exact f32; output (2, W*C) f32.
    """
    s = jnp.sum(stats, axis=0)                                    # (2, W*C)
    c = gamma.shape[0]
    s = s.reshape(2, width, c).sum(axis=1)                        # (2, C) per-channel totals
    mean = s[0] / m
    # one-pass E[x^2] - mean^2 (biased, training-mode); fine at these magnitudes/tolerance.
    var = s[1] / m - mean * mean
    scale = gamma * jax.lax.rsqrt(var + _EPS)
    shift = beta - mean * scale
    return jnp.stack([jnp.tile(scale, width), jnp.tile(shift, width)]).astype(jnp.float32)


def two_conv_block(x_nchw, params):
    """PyTorch-equivalent forward (training-mode BN).  Input/output are NCHW float32."""
    w1, b1, g1, be1, w2, b2, g2, be2 = params
    del b1, b2  # conv biases are exactly cancelled by training-mode BN mean subtraction
    n, cin, h, w = x_nchw.shape
    cmid, cout = w1.shape[0], w2.shape[0]
    wcin, wcmid, wcout = w * cin, w * cmid, w * cout

    # One fused XLA pass over x: NCHW -> lane-dense (N, H, W*Cin), H-halo pad, bf16 cast.
    x_ld = jnp.transpose(x_nchw, (0, 2, 3, 1)).reshape(n, h, wcin)
    x_ld = jnp.pad(x_ld, ((0, 0), (1, 1), (0, 0))).astype(jnp.bfloat16)   # (N, H+2, W*Cin)

    a1 = _banded_conv_weights(jnp.transpose(w1, (2, 3, 1, 0)), w)   # (3*W*Cin,  W*Cmid)
    a2 = _banded_conv_weights(jnp.transpose(w2, (2, 3, 1, 0)), w)   # (3*W*Cmid, W*Cout)

    cp = pltpu.CompilerParams(dimension_semantics=("parallel",),
                              vmem_limit_bytes=32 * 1024 * 1024)

    # ---------------- pass 1: conv1 + per-tile stats ----------------
    y1, s1 = pl.pallas_call(
        conv_stats_kernel,
        grid=(n,),
        in_specs=[pl.BlockSpec((None, h + 2, wcin), lambda i: (i, 0, 0)),
                  pl.BlockSpec((3 * wcin, wcmid), lambda i: (0, 0))],
        out_specs=[pl.BlockSpec((None, h + 2, wcmid), lambda i: (i, 0, 0)),
                   pl.BlockSpec((None, 2, wcmid), lambda i: (i, 0, 0))],
        out_shape=(jax.ShapeDtypeStruct((n, h + 2, wcmid), jnp.bfloat16),
                   jax.ShapeDtypeStruct((n, 2, wcmid), jnp.float32)),
        compiler_params=cp,
    )(x_ld, a1)

    ss1 = _bn_fold(s1, g1, be1, n * h * w, w)                       # (2, W*Cmid) f32

    # ---------------- pass 2: BN1 + ReLU + conv2 + per-tile stats ----------------
    y2, s2 = pl.pallas_call(
        bn_relu_conv_stats_kernel,
        grid=(n,),
        in_specs=[pl.BlockSpec((None, h + 2, wcmid), lambda i: (i, 0, 0)),
                  pl.BlockSpec((2, wcmid), lambda i: (0, 0)),
                  pl.BlockSpec((3 * wcmid, wcout), lambda i: (0, 0))],
        out_specs=[pl.BlockSpec((None, h, wcout), lambda i: (i, 0, 0)),
                   pl.BlockSpec((None, 2, wcout), lambda i: (i, 0, 0))],
        out_shape=(jax.ShapeDtypeStruct((n, h, wcout), jnp.bfloat16),
                   jax.ShapeDtypeStruct((n, 2, wcout), jnp.float32)),
        compiler_params=cp,
    )(y1, ss1, a2)

    ss2 = _bn_fold(s2, g2, be2, n * h * w, w)                       # (2, W*Cout) f32

    # ---------------- pass 3: BN2 + ReLU, bf16 lane-dense output ----------------
    out = pl.pallas_call(
        bn_relu_kernel,
        grid=(n,),
        in_specs=[pl.BlockSpec((None, h, wcout), lambda i: (i, 0, 0)),
                  pl.BlockSpec((2, wcout), lambda i: (0, 0))],
        out_specs=pl.BlockSpec((None, h, wcout), lambda i: (i, 0, 0)),
        out_shape=jax.ShapeDtypeStruct((n, h, wcout), jnp.bfloat16),
        compiler_params=cp,
    )(y2, ss2)

    # Interface requirement of the PyTorch module: back to NCHW f32 (one fused XLA pass).
    return jnp.transpose(out.reshape(n, h, w, cout), (0, 3, 1, 2)).astype(jnp.float32)


# --------------------------------------------------------------------------------------
# reference + test
# --------------------------------------------------------------------------------------
def _reference(x_nchw, params):
    """Pure-JAX f32 reference (matches the PyTorch training-mode forward, biases included)."""
    w1, b1, g1, be1, w2, b2, g2, be2 = params

    def conv(x, w, b):
        y = jax.lax.conv_general_dilated(
            x, w, window_strides=(1, 1), padding="SAME",
            dimension_numbers=("NCHW", "OIHW", "NCHW"))
        return y + b[None, :, None, None]

    def bn_relu(x, g, be):
        mean = jnp.mean(x, axis=(0, 2, 3), keepdims=True)
        var = jnp.mean(jnp.square(x - mean), axis=(0, 2, 3), keepdims=True)
        y = (x - mean) * jax.lax.rsqrt(var + _EPS)
        y = y * g[None, :, None, None] + be[None, :, None, None]
        return jnp.maximum(y, 0.0)

    y = bn_relu(conv(x_nchw, w1, b1), g1, be1)
    y = bn_relu(conv(y, w2, b2), g2, be2)
    return y


if __name__ == "__main__":
    # Small shapes consistent with the module: TwoConvBlock(4, 8, 4), NCHW input.
    N, Cin, Cmid, Cout, H, W = 2, 4, 8, 4, 16, 16

    key = jax.random.PRNGKey(0)
    kx, kw1, kb1, kw2, kb2, kg1, kbe1, kg2, kbe2 = jax.random.split(key, 9)
    x = jax.random.normal(kx, (N, Cin, H, W), jnp.float32)

    # Deterministic init mimicking PyTorch Conv2d default (uniform +-1/sqrt(fan_in)).
    bnd1 = 1.0 / float(np.sqrt(Cin * 9))
    w1 = jax.random.uniform(kw1, (Cmid, Cin, 3, 3), jnp.float32, -bnd1, bnd1)
    b1 = jax.random.uniform(kb1, (Cmid,), jnp.float32, -bnd1, bnd1)
    bnd2 = 1.0 / float(np.sqrt(Cmid * 9))
    w2 = jax.random.uniform(kw2, (Cout, Cmid, 3, 3), jnp.float32, -bnd2, bnd2)
    b2 = jax.random.uniform(kb2, (Cout,), jnp.float32, -bnd2, bnd2)
    # Non-trivial BN affine params to exercise the scale/shift path.
    g1 = jax.random.uniform(kg1, (Cmid,), jnp.float32, 0.5, 1.5)
    be1 = jax.random.uniform(kbe1, (Cmid,), jnp.float32, -0.5, 0.5)
    g2 = jax.random.uniform(kg2, (Cout,), jnp.float32, 0.5, 1.5)
    be2 = jax.random.uniform(kbe2, (Cout,), jnp.float32, -0.5, 0.5)

    params = (w1, b1, g1, be1, w2, b2, g2, be2)

    out = two_conv_block(x, params)
    out = jax.block_until_ready(out)

    ref = _reference(x, params)
    assert out.shape == (N, Cout, H, W), out.shape
    # Kernels feed the MXU bf16 inputs and stage bf16 intermediates (f32 accumulation and
    # exact-f32 BN statistics); the reference is pure f32, so the tolerance accounts for
    # bf16 rounding through two conv+BN stages.
    np.testing.assert_allclose(np.asarray(out), np.asarray(ref), rtol=5e-2, atol=5e-2)

    print("KERNEL_OK")
</pallas_src>

<mosaic_0001>
module attributes {stable_mosaic.version = 11 : i64} {
  func.func @conv_stats_kernel(%arg0: i32, %arg1: memref<1x18x64xbf16, #tpu.memory_space<vmem>>, %arg2: memref<192x128xbf16, #tpu.memory_space<vmem>>, %arg3: memref<1x18x128xbf16, #tpu.memory_space<vmem>>, %arg4: memref<1x2x128xf32, #tpu.memory_space<vmem>>) attributes {dimension_semantics = [#tpu.dimension_semantics<parallel>], iteration_bounds = array<i64: 2>, scalar_prefetch = 0 : i64, scratch_operands = 0 : i64, tpu.core_type = #tpu.core_type<tc>, window_params = [{transform_indices = @transform_0, window_bounds = array<i64: 1, 18, 64>}, {pipeline_mode = #tpu.pipeline_mode<synchronous>, transform_indices = @transform_1, window_bounds = array<i64: 192, 128>}, {transform_indices = @transform_2, window_bounds = array<i64: 1, 18, 128>}, {transform_indices = @transform_3, window_bounds = array<i64: 1, 2, 128>}]} {
    %c0 = arith.constant 0 : index
    %c0_0 = arith.constant 0 : index
    %c0_1 = arith.constant 0 : index
    %0 = vector.load %arg1[%c0, %c0_0, %c0_1] : memref<1x18x64xbf16, #tpu.memory_space<vmem>>, vector<1x18x64xbf16>
    %1 = vector.shape_cast %0 : vector<1x18x64xbf16> to vector<18x64xbf16>
    %2 = vector.extract_strided_slice %1 {offsets = [0, 0], sizes = [16, 64], strides = [1, 1]} : vector<18x64xbf16> to vector<16x64xbf16>
    %3 = vector.extract_strided_slice %1 {offsets = [1, 0], sizes = [16, 64], strides = [1, 1]} : vector<18x64xbf16> to vector<16x64xbf16>
    %4 = vector.extract_strided_slice %1 {offsets = [2, 0], sizes = [16, 64], strides = [1, 1]} : vector<18x64xbf16> to vector<16x64xbf16>
    %5 = tpu.concatenate %2, %3, %4 in 1 : vector<16x64xbf16>, vector<16x64xbf16>, vector<16x64xbf16> -> vector<16x192xbf16>
    %c0_2 = arith.constant 0 : index
    %c0_3 = arith.constant 0 : index
    %6 = vector.load %arg2[%c0_2, %c0_3] : memref<192x128xbf16, #tpu.memory_space<vmem>>, vector<192x128xbf16>
    %cst = arith.constant dense<0.000000e+00> : vector<16x128xf32>
    %7 = tpu.matmul %5, %6, %cst {dimension_numbers = #tpu.dot_dimension_numbers<[1], [0], [0], [1], [0, 0, 1, 1], [], []>} : vector<16x192xbf16>, vector<192x128xbf16>, vector<16x128xf32> -> vector<16x128xf32>
    %cst_4 = arith.constant dense<0.000000e+00> : vector<128xf32>
    %8 = vector.multi_reduction <add>, %7, %cst_4 [0] : vector<16x128xf32> to vector<128xf32>
    %9 = vector.shape_cast %8 : vector<128xf32> to vector<1x128xf32>
    %10 = arith.mulf %7, %7 : vector<16x128xf32>
    %cst_5 = arith.constant dense<0.000000e+00> : vector<128xf32>
    %11 = vector.multi_reduction <add>, %10, %cst_5 [0] : vector<16x128xf32> to vector<128xf32>
    %12 = vector.shape_cast %11 : vector<128xf32> to vector<1x128xf32>
    %13 = tpu.concatenate %9, %12 in 0 : vector<1x128xf32>, vector<1x128xf32> -> vector<2x128xf32>
    %c0_6 = arith.constant 0 : index
    %c0_7 = arith.constant 0 : index
    %c0_8 = arith.constant 0 : index
    %14 = vector.load %arg4[%c0_6, %c0_7, %c0_8] : memref<1x2x128xf32, #tpu.memory_space<vmem>>, vector<1x2x128xf32>
    %15 = vector.shape_cast %14 : vector<1x2x128xf32> to vector<2x128xf32>
    %16 = vector.shape_cast %13 : vector<2x128xf32> to vector<1x2x128xf32>
    tpu.vector_store %arg4[%c0_6, %c0_7, %c0_8], %16 {strides = array<i32>} : memref<1x2x128xf32, #tpu.memory_space<vmem>>, vector<1x2x128xf32>,
    %cst_9 = arith.constant 0.000000e+00 : bf16
    %17 = vector.broadcast %cst_9 : bf16 to vector<1x128xbf16>
    %18 = arith.truncf %7 : vector<16x128xf32> to vector<16x128xbf16>
    %19 = tpu.concatenate %17, %18, %17 in 0 : vector<1x128xbf16>, vector<16x128xbf16>, vector<1x128xbf16> -> vector<18x128xbf16>
    %c0_10 = arith.constant 0 : index
    %c0_11 = arith.constant 0 : index
    %c0_12 = arith.constant 0 : index
    %20 = vector.load %arg3[%c0_10, %c0_11, %c0_12] : memref<1x18x128xbf16, #tpu.memory_space<vmem>>, vector<1x18x128xbf16>
    %21 = vector.shape_cast %20 : vector<1x18x128xbf16> to vector<18x128xbf16>
    %22 = vector.shape_cast %19 : vector<18x128xbf16> to vector<1x18x128xbf16>
    tpu.vector_store %arg3[%c0_10, %c0_11, %c0_12], %22 {strides = array<i32>} : memref<1x18x128xbf16, #tpu.memory_space<vmem>>, vector<1x18x128xbf16>,
    return
  }
  func.func @transform_0(%arg0: i32) -> (i32, i32, i32) {
    %c0_i32 = arith.constant 0 : i32
    %c0_i32_0 = arith.constant 0 : i32
    %c0_i32_1 = arith.constant 0 : i32
    return %arg0, %c0_i32, %c0_i32_0 : i32, i32, i32
  }
  func.func @transform_1(%arg0: i32) -> (i32, i32) {
    %c0_i32 = arith.constant 0 : i32
    %c0_i32_0 = arith.constant 0 : i32
    %c0_i32_1 = arith.constant 0 : i32
    return %c0_i32, %c0_i32_0 : i32, i32
  }
  func.func @transform_2(%arg0: i32) -> (i32, i32, i32) {
    %c0_i32 = arith.constant 0 : i32
    %c0_i32_0 = arith.constant 0 : i32
    %c0_i32_1 = arith.constant 0 : i32
    return %arg0, %c0_i32, %c0_i32_0 : i32, i32, i32
  }
  func.func @transform_3(%arg0: i32) -> (i32, i32, i32) {
    %c0_i32 = arith.constant 0 : i32
    %c0_i32_0 = arith.constant 0 : i32
    %c0_i32_1 = arith.constant 0 : i32
    return %arg0, %c0_i32, %c0_i32_0 : i32, i32, i32
  }
}

</mosaic_0001>

<bundles_post_ra>
// kernel: tpu_custom_call.1
= control target key start
LH: loop header
LB: loop body
LE: loop exit
PB: predicated region body
PF: predicated region fallthrough
CT: control target
= control target key end

     0   :  { %9 = vsyncpa [#allocation3], 0  ;;  %s914_s0 = inlined_call_operand.vmem [shape: bf16[2,18,64], index: 0, kind: input, shape index: {}]   ;;  %s915_s1 = inlined_call_operand.hbm [shape: bf16[192,128], index: 1, kind: input, shape index: {}]   ;;  %s916_s2 = inlined_call_operand.vmem [shape: bf16[2,18,128], index: 2, kind: output, shape index: {0}]   ;;  %s917_s3 = inlined_call_operand.hbm [shape: f32[2,2,128], index: 3, kind: output, shape index: {1}]  }
   0x1   :  { %10 = vsyncpa [#allocation4], 0 }
   0x2   :  { %12 = vsyncpa [#allocation4 + $0x1], 0  ;;  %s760_s12 = smov 0   ;;  %s762_s13 = smov 0  }
   0x3   :  { %s764_s14 = smov 0   ;;  %s766_s15 = smov 0  }
   0x4 LB: > { %s781_s16 = sadd.s32 4294967295, %s732_s15   ;;  %s538_s17 = sadd.s32 4294967294, %s732_s15   ;;  %s732_s15 = sphi %s766_s15, %s933_s15   ;;  %s728_s14 = sphi %s764_s14, %s932_s14   ;;  %s724_s13 = sphi %s762_s13, %s931_s13   ;;  %s720_s12 = sphi %s760_s12, %s930_s12  }
   0x5   : > { %s785_s18 = sadd.s32 1, %s732_s15   ;;  %s98_s19 = sadd.s32 1, %s728_s14 }
   0x6   : > { %s95_s20 = ssub.s32 %s732_s15, %s785_s18  ;;  %p108_p0 = scmp.ne.s32.totalorder %s728_s14, %s724_s13 }
   0x7   : > { %p96_p1 = scmp.eq.s32.totalorder %s95_s20, 0  ;;  %p109_p2 = scmp.eq.s32.totalorder %s781_s16, 1 }
   0x8   : > { %p114_p3 = scmp.ne.s32.totalorder %s724_s13, %s720_s12  ;;  %p115_p4 = scmp.eq.s32.totalorder %s538_s17, 1 }
   0x9   : > { %s796_s21 = scalar_select %p96_p1, %s728_s14, %s98_s19  }
   0xa   : > { %p798_p5 = por %p109_p2, %p108_p0  ;;  %p802_p6 = por %p115_p4, %p114_p3 }
   0xb   : > { %p539_p7 = scmp.ge.s32.totalorder %s732_s15, 1  ;;  %p122_p8 = scmp.lt.s32.totalorder %s732_s15, 3 }
   0xc   : > { %s921_s22 = scalar_select %p798_p5, 1, 0 }
   0xd   : > { %s922_s23 = scalar_select %p802_p6, 1, 0 }
   0xe   : > { %p918_p9 = scmp.eq.s32.totalorder %s781_s16, 0  ;;  %p809_p10 = pnand %p539_p7, %p122_p8 }
   0xf   : > { %s734_s25 = smov [#allocation2]   ;;  %s638_s30 = scalar_lea.hbm %s915_s1, 1536 }
  0x10   : > { %s923_s24 = scalar_select %p809_p10, 1, 0 }
  0x11   : > { %s134_s26 = sshll.u32 %s734_s25, 4  ;;  %p576_p11 = pneg %p809_p10  ;;  %s135_s26 = int_to_ptr.vmem [resolvable:$true] %s134_s26 }
  0x12   : > { %p639_p13 = scmp.ne.s32.totalorder %s915_s1, %s638_s30  ;;  %p645_p3 = scmp.lt.u32.totalorder %s638_s30, %s915_s1 }
  0x13   : > { %p817_p12 = pnand %p918_p9, %p576_p11 }
  0x15   : > { %p640_p0 = pneg %p817_p12 }
  0x17   : > { %p641_p1 = pnand %p640_p0, %p639_p13 }
  0x19   : > { %p642_p2 = pneg %p641_p1 }
  0x1b   : > { %p647_p4 = pnand %p645_p3, %p642_p2 }
  0x1d   : > { %650 = shalt.err (!%p647_p4)
}
  0x1e   : > { %s651_s8 = scalar_lea.vmem %s135_s26, 1536  ;;  %p659_p9 = scmp.lt.s32.totalorder %s135_s26, %s135_s26 }
  0x1f   : > { %p652_p7 = scmp.ne.s32.totalorder %s135_s26, %s651_s8  ;;  %p660_p6 = scmp.lt.s32.totalorder %s651_s8, %s651_s8 }
  0x21   : > { %p654_p8 = pnand %p652_p7, %p640_p0  ;;  %p661_p5 = por %p660_p6, %p659_p9 }
  0x23   : > { %p655_p11 = pneg %p654_p8 }
  0x25   : > { %p662_p10 = pnand %p661_p5, %p655_p11 }
  0x27   : > { %665 = shalt.err (!%p662_p10)
}
  0x28   : > { %s735_s9 = smov 64   ;;  %s736_s10 = smov 4  }
  0x29   : > { %579 = dma.hbm_to_vmem [thread:$0]  (!%p817_p12), %s915_s1, 1536, %s135_s26, [#allocation3], %s735_s9, %s735_s9, %s736_s10  }
  0x2a   : > { %p925_p13 = scmp.ne.s32.totalorder %s923_s24, 0 }
  0x2b   : > { %p926_p1 = scmp.eq.s32.totalorder (!%p925_p13), %s781_s16, 0 }
  0x2c   : > { %158 = sbr.rel (%p925_p13) target bundleno = 428 (0x1ac), region = 28 }
  0x33   : > { %711 = dma.done.wait (%p926_p1), [#allocation3], 1536   ;;  %p927_p0 = pmov %p926_p1 }
  0x34   : > { %p187_p5 = scmp.lt.s32.totalorder %s781_s16, 1  ;;  %v737_v0 = vmov 0   ;;  %vm209_vm0 = vsmask.f32 7424  ;;  %v626_v3 = vld [vmem:[#allocation2] sm:$0xff]   ;;  %vm224_vm1 = vcmask 1046528  }
  0x35   : > { %713 = vsyncadd (%p927_p0), [#allocation3], 4294965760  ;;  %331 = vmatprep.subr.bf16.mxu0 %v737_v0  ;;  %v627_v7 = vld [vmem:[#allocation2 + $0x8] sm:$0xff]   ;;  %vm228_vm2 = vcmask 523264   ;;  %v628_v13 = vld [vmem:[#allocation2 + $0x10] sm:$0xff]   ;;  %s738_s27 = smov 64  }
  0x36   : > { %s845_s19 = scalar_select %p187_p5, %s781_s16, 1  ;;  %332 = vmatpush1.bf16.msra.mxu0 %v626_v3  ;;  %v629_v16 = vld [vmem:[#allocation2 + $0x18] sm:$0xff]   ;;  %v630_v17 = vld [vmem:[#allocation2 + $0x20] sm:$0xff]   ;;  %v631_v18 = vld [vmem:[#allocation2 + $0x28] sm:$0xff]   ;;  %vm388_vm3 = vcmask 1040384  }
  0x37   : > { %333 = vmatprep.subr.bf16.mxu0 %v737_v0  ;;  %v632_v19 = vld [vmem:[#allocation2 + $0x30] sm:$0xff]   ;;  %v633_v20 = vld [vmem:[#allocation2 + $0x38] sm:$0xff]   ;;  %v634_v21 = vld [vmem:[#allocation2 + $0x40] sm:$0xff]   ;;  %vm402_vm4 = vsmask.f32 256  ;;  %s184_s28 = sand.u32 1, %s724_s13  }
  0x38   : > { %s569_s20 = smul.u32 12, %s845_s19  ;;  %v635_v22 = vld [vmem:[#allocation2 + $0x48] sm:$0xff]   ;;  %v636_v23 = vld [vmem:[#allocation2 + $0x50] sm:$0xff]   ;;  %v637_v24 = vld [vmem:[#allocation2 + $0x58] sm:$0xff]   ;;  %s544_s5 = sshll.u32 %s184_s28, 1 }
  0x39   : > { %vm403_vm5 = vmand %vm388_vm3, %vm402_vm4  ;;  %s566_s6 = sshll.u32 %s781_s16, 5  ;;  %s186_s7 = scalar_lea.vmem [#allocation5], %s544_s5 }
  0x3a   : > { %s191_s26 = scalar_lea.vmem %s914_s0, %s569_s20  ;;  %334 = vmatpush1.bf16.msra.mxu0 %v627_v7  ;;  %s196_s4 = scalar_lea.vmem %s916_s2, %s569_s20 }
  0x3b   : > { %v624_v1 = vld [vmem:[%s191_s26] sm:$0xff]   ;;  %v625_v2 = vld [vmem:[%s191_s26 + $0x8] ss:$0 sps:$4 sm:$0x11]   ;;  %335 = vmatprep.subr.bf16.mxu0 %v737_v0  ;;  %s442_s8 = sshll.u32 %s186_s7, 4  ;;  %s869_s11 = scalar_lea.hbm %s917_s3, %s566_s6  ;;  %s871_s8 = int_to_ptr.vmem [resolvable:$true] %s442_s8 }
  0x3c   : > { %v211_v4 = vshrl.u32 %v624_v1, 16  ;;  %v213_v5 = vshll.u32 %v624_v1, 16  ;;  %v218_v6 = vshll.u32 %v625_v2, 16  ;;  %v225_v8 = vrot.slane %v624_v1, 1  ;;  %s426_s17 = scalar_lea.sflag [#allocation4], %s184_s28  ;;  %s666_s16 = scalar_lea.vmem %s871_s8, 32 }
  0x3d   : > { %v226_v11 = vrot.slane %v625_v2, 1  ;;  %p667_p6 = scmp.ne.s32.totalorder %s871_s8, %s666_s16  ;;  %p928_p9 = scmp.ne.s32.totalorder %s921_s22, 0 }
  0x3e   : > { %v215_v9 = vrot.slane %v213_v5, 1  ;;  %v220_v10 = vrot.slane %v218_v6, 1  ;;  %336 = vmatpush1.bf16.msra.mxu0 %v628_v13  ;;  %s739_s19 = smov [#allocation5]  }
  0x3f   : > { %v227_v14 = vsel %vm224_vm1, %v225_v8, %v226_v11  ;;  %337 = vmatprep.subr.bf16.mxu0 %v737_v0  ;;  %p668_p10 = pnand %p667_p6, %p928_p9  ;;  %s670_s20 = sshll.u32 %s739_s19, 4  ;;  %s671_s20 = int_to_ptr.vmem [resolvable:$false] %s670_s20 }
  0x40   : > { %v216_v12 = vor.u32 %v215_v9, %v211_v4  ;;  %561 = vmatprep.mubr.msk.bf16.mxu0 %vm228_vm2, %v227_v14  ;;  %s672_s25 = scalar_lea.vmem %s671_s20, 64  ;;  %p673_p2 = scmp.lt.s32.totalorder %s871_s8, %s671_s20 }
  0x41   : > { %p669_p12 = pneg %p668_p10  ;;  %p674_p3 = scmp.lt.s32.totalorder %s672_s25, %s666_s16 }
  0x42   : > { %v221_v15 = vsel %vm209_vm0, %v216_v12, %v220_v10  ;;  %338 = vmatpush1.bf16.msra.mxu0 %v629_v16 }
  0x43   : > { %222 = vrot.lane.b32.xlu0 %v221_v15, %s738_s27  ;;  %339 = vmatprep.subr.bf16.mxu0 %v737_v0  ;;  %p675_p4 = por %p674_p3, %p673_p2 }
  0x45   : > { %p676_p7 = pnand %p675_p4, %p669_p12 }
  0x46   : > { %340 = vmatpush1.bf16.msra.mxu0 %v630_v17 }
  0x47   : > { %341 = vmatprep.subr.bf16.mxu0 %v737_v0 }
  0x4a   : > { %342 = vmatpush1.bf16.msra.mxu0 %v631_v18 }
  0x4b   : > { %343 = vmatprep.subr.bf16.mxu0 %v737_v0 }
  0x4e   : > { %344 = vmatpush1.bf16.msra.mxu0 %v632_v19 }
  0x4f   : > { %345 = vmatprep.subr.bf16.mxu0 %v737_v0 }
  0x52   : > { %346 = vmatpush1.bf16.msra.mxu0 %v633_v20 }
  0x53   : > { %347 = vmatprep.subr.bf16.mxu0 %v737_v0 }
  0x56   : > { %348 = vmatpush1.bf16.msra.mxu0 %v634_v21 }
  0x57   : > { %349 = vmatprep.subr.bf16.mxu0 %v737_v0 }
  0x5a   : > { %350 = vmatpush1.bf16.msra.mxu0 %v635_v22 }
  0x5b   : > { %351 = vmatprep.subr.bf16.mxu0 %v737_v0 }
  0x5e   : > { %352 = vmatpush1.bf16.msra.mxu0 %v636_v23 }
  0x5f   : > { %353 = vmatprep.subr.bf16.mxu0 %v737_v0 }
  0x62   : > { %354 = vmatpush1.bf16.msra.mxu0 %v637_v24 }
  0xb5   : > { %v223_v25 = vpop.permute.xlu0 %222 }
  0xb6   : > { %v230_v26 = vsel %vm228_vm2, %v624_v1, %v223_v25 }
  0xb7   : > { %364 = vmatmul.mubr.bf16.vlgmr.msra.gmra.mrb[0].mxu0 %v230_v26 }
 0x18a   : > { %v365_v27 = vpop.f32.mrb[0].mxu0 }
 0x18b   : > { %v367_v28 = vpop.f32.mrb[1].mxu0  ;;  %v379_v30 = vmul.f32 %v365_v27, %v365_v27 }
 0x18c   : > { %v368_v29 = vpop.f32.mrb[2].mxu0 }
 0x18d   : > { %v372_v31 = vadd.f32 %v368_v29, %v365_v27  ;;  %v380_v32 = vmul.f32 %v368_v29, %v368_v29  ;;  %v391_v33 = vpack.c.bf16 %v368_v29, %v365_v27  ;;  %v370_v34 = vpop.f32.mrb[3].mxu0 }
 0x18f   : > { %v373_v35 = vrot.slane %v372_v31, 4  ;;  %v381_v36 = vadd.f32 %v380_v32, %v379_v30  ;;  %v393_v37 = vshrl.u32 %v391_v33, 16  ;;  %v396_v41 = vshll.u32 %v391_v33, 16 }
 0x191   : > { %v374_v38 = vadd.f32 %v373_v35, %v372_v31  ;;  %v382_v39 = vrot.slane %v381_v36, 4  ;;  %v395_v40 = vrot.slane %v393_v37, 7 }
 0x193   : > { %v375_v42 = vrot.slane %v374_v38, 2  ;;  %v383_v43 = vadd.f32 %v382_v39, %v381_v36  ;;  %v398_v44 = vor.u32 %v396_v41, %v395_v40  ;;  %v405_v45 = vsel %vm403_vm5, %v395_v40, 0 }
 0x194   : > { %v564_v46 = vcombine.low %v405_v45, %v405_v45 }
 0x195   : > { %v376_v47 = vadd.f32 %v375_v42, %v374_v38  ;;  %v384_v48 = vrot.slane %v383_v43, 2  ;;  %v404_v49 = vsel %vm403_vm5, 0, %v398_v44 }
 0x196   : > { %v562_v50 = vcombine.low %v404_v49, %v404_v49  ;;  %v563_v51 = vcombine.high %v404_v49, %v404_v49  ;;  %419 = vst [vmem:[%s196_s4 + $0x8] sm:$0x1] %v564_v46 }
 0x197   : > { %v377_v52 = vrot.slane %v376_v47, 1  ;;  %v385_v53 = vadd.f32 %v384_v48, %v383_v43 }
 0x198   : > { %417 = vst [vmem:[%s196_s4] sm:$0xf] %v562_v50  ;;  %418 = vst [vmem:[%s196_s4 + $0x4] sm:$0xf] %v563_v51 }
 0x199   : > { %v386_v54 = vrot.slane %v385_v53, 1  ;;  %v378_v55 = vadd.f32 %v377_v52, %v376_v47 }
 0x19b   : > { %v387_v56 = vadd.f32 %v386_v54, %v385_v53 }
 0x19d   : > { %v389_v57 = vsel %vm388_vm3, %v378_v55, %v387_v56 }
 0x19e   : > { %390 = vst [vmem:[%s186_s7] sm:$0x3] %v389_v57 }
 0x19f   : > { %679 = shalt.err (!%p676_p7)
}
 0x1a0   : > { %s680_s24 = scalar_lea.hbm %s869_s11, 32  ;;  %s684_s28 = scalar_lea.hbm %s917_s3, 64 }
 0x1a1   : > { %p681_p8 = scmp.ne.s32.totalorder %s869_s11, %s680_s24  ;;  %p685_p1 = scmp.lt.u32.totalorder %s869_s11, %s917_s3 }
 0x1a2   : > { %p686_p0 = scmp.lt.u32.totalorder %s684_s28, %s680_s24  ;;  %p688_p6 = scmp.lt.u32.totalorder %s680_s24, %s869_s11 }
 0x1a3   : > { %p682_p11 = pnand %p681_p8, %p928_p9 }
 0x1a4   : > { %p687_p5 = por %p686_p0, %p685_p1 }
 0x1a5   : > { %p683_p13 = pneg %p682_p11 }
 0x1a6   : > { %p689_p10 = por %p688_p6, %p687_p5 }
 0x1a8   : > { %p690_p12 = pnand %p689_p10, %p683_p13 }
 0x1aa   : > { %693 = shalt.err (!%p690_p12)
}
 0x1ab   : > { %574 = dma.vmem_to_hbm [thread:$0]  (%p928_p9), %s871_s8, 32, %s869_s11, %s426_s17  }
 0x1ac PF: > { %p586_p2 = scmp.ge.s32.totalorder %s732_s15, 2  ;;  %s462_s4 = sand.u32 1, %s720_s12  }
 0x1ad   : > { %p929_p3 = scmp.ne.s32.totalorder %s922_s23, 0  ;;  %s463_s5 = scalar_lea.sflag [#allocation4], %s462_s4 }
 0x1af   : > { %p581_p4 = pnand %p586_p2, %p929_p3 }
 0x1b1   : > { %715 = dma.done.wait (!%p581_p4), %s463_s5, 32  }
 0x1b2   : > { %717 = vsyncadd (!%p581_p4), %s463_s5, 4294967264  ;;  %p15_p7 = scmp.ge.s32.totalorder %s785_s18, 4   ;;  %s930_s12 = smov %s724_s13 }
 0x1b3   : > { %s931_s13 = smov %s728_s14  ;;  %s932_s14 = smov %s796_s21 }
 0x1b4   : > { %s933_s15 = smov %s785_s18  ;;  %17 = sbr.rel (!%p15_p7) target bundleno = 4 (0x4), region = 80 }
 0x1bb   :  { %468 = vsyncpa [#allocation3], 1 }
 0x1bc   :  { %470 = vsyncpa [#allocation3 + $0x1], 1 }
 0x1bd   :  { %471 = vsyncpa [#allocation4], 1 }
 0x1be   :  { %473 = vsyncpa [#allocation4 + $0x1], 1 }

</bundles_post_ra>
